<compile_context>
chip_gen: v7x
topology: tpu7x:2x2x1
jax: 0.10.0
libtpu: 0.0.40
codegen_flags: <defaults>
</compile_context>

<pallas_src>
import functools
import math

import jax
import jax.numpy as jnp
from jax.experimental import pallas as pl
from jax.experimental.pallas import tpu as pltpu


def _round_up(n: int, m: int) -> int:
    return ((n + m - 1) // m) * m


def _conv1d_same_kernel(x_ref, halo_ref, w_ref, b_ref, o_ref, *, ts: int, pad: int):
    """One (batch b, seq-tile i) step of the 'same' 1-D conv.

    x_ref:    (1, TS, C_in)        current sequence tile
    halo_ref: (1, 1, max(2*pad,1), C_in)  pad rows before + pad rows after the tile
    w_ref:    (K, C_in, C_out)     conv weight, tap-major
    b_ref:    (1, C_out)           bias
    o_ref:    (1, TS, C_out)
    """
    x = x_ref[0, :, :]                                        # (TS, C_in)
    if pad:
        halo = halo_ref[0, 0, :, :]                           # (2*pad, C_in)
        ext = jnp.concatenate([halo[:pad, :], x, halo[pad:, :]], axis=0)  # (TS+2p, C)
    else:
        ext = x

    n_taps = w_ref.shape[0]
    # K shifted matmuls on the MXU, f32 accumulation.
    acc = jnp.dot(ext[0:ts, :], w_ref[0, :, :], preferred_element_type=jnp.float32)
    for t in range(1, n_taps):                                # K is small & static
        acc = acc + jnp.dot(ext[t:t + ts, :], w_ref[t, :, :],
                            preferred_element_type=jnp.float32)

    o_ref[0, :, :] = (acc + b_ref[:, :]).astype(o_ref.dtype)


@functools.partial(jax.jit, static_argnames=("block_seq",))
def conv_spe_forward(x: jnp.ndarray, weight: jnp.ndarray, bias: jnp.ndarray,
                     *, block_seq: int = 512) -> jnp.ndarray:
    """x: (B, S, C); weight: (C_out, C_in, K) (PyTorch Conv1d layout); bias: (C_out,)."""
    B, S, C = x.shape
    c_out, c_in, K = weight.shape
    assert c_in == C and c_out == C, "ConvSPE uses in_features -> in_features"
    assert K % 2 == 1, "only odd kernel_size ('same' conv) supported"
    pad = K // 2

    # --- sequence tiling (multiple of 8 sublanes, capped by block_seq) -------------
    ts = _round_up(min(block_seq, _round_up(S, 8)), 8)
    n_tiles = pl.cdiv(S, ts)
    s_pad = n_tiles * ts
    x_pad = jnp.pad(x, ((0, 0), (0, s_pad - S), (0, 0))) if s_pad != S else x

    # --- halo side-array: pad rows before / after every tile (zeros outside [0, S)) -
    halo_rows = max(2 * pad, 1)
    if pad:
        x_ext = jnp.pad(x_pad, ((0, 0), (pad, pad), (0, 0)))          # zeros = conv pad
        starts = jnp.arange(n_tiles) * ts                              # (n_tiles,)
        left = starts[:, None] + jnp.arange(pad)[None, :]              # rows s0-pad..s0-1
        right = starts[:, None] + ts + pad + jnp.arange(pad)[None, :]  # rows s0+TS..
        idx = jnp.concatenate([left, right], axis=1).reshape(-1)
        halo = jnp.take(x_ext, idx, axis=1).reshape(B, n_tiles, halo_rows, C)
    else:
        halo = jnp.zeros((B, n_tiles, halo_rows, C), x.dtype)

    # --- weights/bias prepped once, in the activation dtype -------------------------
    w_taps = jnp.transpose(weight, (2, 1, 0)).astype(x.dtype)          # (K, C_in, C_out)
    b_row = bias.reshape(1, C).astype(x.dtype)                         # (1, C_out)

    out = pl.pallas_call(
        functools.partial(_conv1d_same_kernel, ts=ts, pad=pad),
        out_shape=jax.ShapeDtypeStruct((B, s_pad, C), x.dtype),
        grid=(B, n_tiles),
        in_specs=[
            pl.BlockSpec((1, ts, C), lambda b, i: (b, i, 0)),              # x tile
            pl.BlockSpec((1, 1, halo_rows, C), lambda b, i: (b, i, 0, 0)),  # halo
            pl.BlockSpec((K, C, C), lambda b, i: (0, 0, 0)),                # weights
            pl.BlockSpec((1, C), lambda b, i: (0, 0)),                      # bias
        ],
        out_specs=pl.BlockSpec((1, ts, C), lambda b, i: (b, i, 0)),
        input_output_aliases={0: 0},               # reuse x_pad's HBM for the output
        compiler_params=pltpu.CompilerParams(
            dimension_semantics=("parallel", "parallel"),
            vmem_limit_bytes=64 * 1024 * 1024),
    )(x_pad, halo, w_taps, b_row)

    return out[:, :S, :] if s_pad != S else out


def _reference_conv_spe(x, weight, bias):
    """Plain-JAX reference (same cross-correlation semantics as torch.nn.Conv1d)."""
    pad = weight.shape[-1] // 2
    y = jax.lax.conv_general_dilated(
        jnp.transpose(x, (0, 2, 1)),          # (B, C, S)
        weight,                               # (O, I, K)
        window_strides=(1,),
        padding=[(pad, pad)],
        dimension_numbers=("NCH", "OIH", "NCH"))
    return jnp.transpose(y, (0, 2, 1)) + bias[None, None, :]


if __name__ == "__main__":
    # Small shapes consistent with the module's forward (B, S, in_features).
    # in_features = 128 keeps the channel (lane) axis dense; block_seq=16 forces
    # multiple sequence tiles so the halo / padding paths are exercised.
    B, S, C, K = 2, 40, 128, 3
    num_heads, num_realizations = 4, 1  # stored on the module, unused by forward

    key = jax.random.PRNGKey(0)
    kx, kw, kb = jax.random.split(key, 3)
    x = jax.random.normal(kx, (B, S, C), dtype=jnp.float32)
    weight = jax.random.normal(kw, (C, C, K), dtype=jnp.float32) / math.sqrt(C * K)
    bias = 0.1 * jax.random.normal(kb, (C,), dtype=jnp.float32)

    out = conv_spe_forward(x, weight, bias, block_seq=16)
    out = jax.block_until_ready(out)

    ref = _reference_conv_spe(x, weight, bias)
    assert out.shape == (B, S, C)
    # Tolerance covers possible differences in MXU f32 pass configuration vs XLA conv.
    assert jnp.allclose(out, ref, atol=2e-2, rtol=2e-2), (
        f"mismatch vs reference, max abs err = {jnp.max(jnp.abs(out - ref))}")

    print("KERNEL_OK")
</pallas_src>

<mosaic_0001>
module attributes {stable_mosaic.version = 11 : i64} {
  func.func @_conv1d_same_kernel(%arg0: i32, %arg1: i32, %arg2: memref<1x16x128xf32, #tpu.memory_space<vmem>>, %arg3: memref<1x1x2x128xf32, #tpu.memory_space<vmem>>, %arg4: memref<3x128x128xf32, #tpu.memory_space<vmem>>, %arg5: memref<1x128xf32, #tpu.memory_space<vmem>>, %arg6: memref<1x16x128xf32, #tpu.memory_space<vmem>>) attributes {dimension_semantics = [#tpu.dimension_semantics<parallel>, #tpu.dimension_semantics<parallel>], iteration_bounds = array<i64: 2, 3>, scalar_prefetch = 0 : i64, scratch_operands = 0 : i64, tpu.core_type = #tpu.core_type<tc>, window_params = [{transform_indices = @transform_0, window_bounds = array<i64: 1, 16, 128>}, {transform_indices = @transform_1, window_bounds = array<i64: 1, 1, 2, 128>}, {pipeline_mode = #tpu.pipeline_mode<synchronous>, transform_indices = @transform_2, window_bounds = array<i64: 3, 128, 128>}, {pipeline_mode = #tpu.pipeline_mode<synchronous>, transform_indices = @transform_3, window_bounds = array<i64: 1, 128>}, {transform_indices = @transform_4, window_bounds = array<i64: 1, 16, 128>}]} {
    %c0 = arith.constant 0 : index
    %c0_0 = arith.constant 0 : index
    %c0_1 = arith.constant 0 : index
    %0 = vector.load %arg2[%c0, %c0_0, %c0_1] : memref<1x16x128xf32, #tpu.memory_space<vmem>>, vector<1x16x128xf32>
    %1 = vector.shape_cast %0 : vector<1x16x128xf32> to vector<16x128xf32>
    %c0_2 = arith.constant 0 : index
    %c0_3 = arith.constant 0 : index
    %c0_4 = arith.constant 0 : index
    %c0_5 = arith.constant 0 : index
    %2 = vector.load %arg3[%c0_2, %c0_3, %c0_4, %c0_5] : memref<1x1x2x128xf32, #tpu.memory_space<vmem>>, vector<1x1x2x128xf32>
    %3 = vector.shape_cast %2 : vector<1x1x2x128xf32> to vector<2x128xf32>
    %4 = vector.extract_strided_slice %3 {offsets = [0, 0], sizes = [1, 128], strides = [1, 1]} : vector<2x128xf32> to vector<1x128xf32>
    %5 = vector.extract_strided_slice %3 {offsets = [1, 0], sizes = [1, 128], strides = [1, 1]} : vector<2x128xf32> to vector<1x128xf32>
    %6 = tpu.concatenate %4, %1, %5 in 0 : vector<1x128xf32>, vector<16x128xf32>, vector<1x128xf32> -> vector<18x128xf32>
    %7 = vector.extract_strided_slice %6 {offsets = [0, 0], sizes = [16, 128], strides = [1, 1]} : vector<18x128xf32> to vector<16x128xf32>
    %c0_6 = arith.constant 0 : index
    %c0_7 = arith.constant 0 : index
    %c0_8 = arith.constant 0 : index
    %8 = vector.load %arg4[%c0_6, %c0_7, %c0_8] : memref<3x128x128xf32, #tpu.memory_space<vmem>>, vector<1x128x128xf32>
    %9 = vector.shape_cast %8 : vector<1x128x128xf32> to vector<128x128xf32>
    %cst = arith.constant dense<0.000000e+00> : vector<16x128xf32>
    %10 = tpu.matmul %7, %9, %cst {dimension_numbers = #tpu.dot_dimension_numbers<[1], [0], [0], [1], [0, 0, 1, 1], [], []>} : vector<16x128xf32>, vector<128x128xf32>, vector<16x128xf32> -> vector<16x128xf32>
    %11 = vector.extract_strided_slice %6 {offsets = [1, 0], sizes = [16, 128], strides = [1, 1]} : vector<18x128xf32> to vector<16x128xf32>
    %c1 = arith.constant 1 : index
    %c0_9 = arith.constant 0 : index
    %c0_10 = arith.constant 0 : index
    %12 = vector.load %arg4[%c1, %c0_9, %c0_10] : memref<3x128x128xf32, #tpu.memory_space<vmem>>, vector<1x128x128xf32>
    %13 = vector.shape_cast %12 : vector<1x128x128xf32> to vector<128x128xf32>
    %cst_11 = arith.constant dense<0.000000e+00> : vector<16x128xf32>
    %14 = tpu.matmul %11, %13, %cst_11 {dimension_numbers = #tpu.dot_dimension_numbers<[1], [0], [0], [1], [0, 0, 1, 1], [], []>} : vector<16x128xf32>, vector<128x128xf32>, vector<16x128xf32> -> vector<16x128xf32>
    %15 = arith.addf %10, %14 : vector<16x128xf32>
    %16 = vector.extract_strided_slice %6 {offsets = [2, 0], sizes = [16, 128], strides = [1, 1]} : vector<18x128xf32> to vector<16x128xf32>
    %c2 = arith.constant 2 : index
    %c0_12 = arith.constant 0 : index
    %c0_13 = arith.constant 0 : index
    %17 = vector.load %arg4[%c2, %c0_12, %c0_13] : memref<3x128x128xf32, #tpu.memory_space<vmem>>, vector<1x128x128xf32>
    %18 = vector.shape_cast %17 : vector<1x128x128xf32> to vector<128x128xf32>
    %cst_14 = arith.constant dense<0.000000e+00> : vector<16x128xf32>
    %19 = tpu.matmul %16, %18, %cst_14 {dimension_numbers = #tpu.dot_dimension_numbers<[1], [0], [0], [1], [0, 0, 1, 1], [], []>} : vector<16x128xf32>, vector<128x128xf32>, vector<16x128xf32> -> vector<16x128xf32>
    %20 = arith.addf %15, %19 : vector<16x128xf32>
    %c0_15 = arith.constant 0 : index
    %c0_16 = arith.constant 0 : index
    %21 = vector.load %arg5[%c0_15, %c0_16] : memref<1x128xf32, #tpu.memory_space<vmem>>, vector<1x128xf32>
    %22 = vector.broadcast %21 : vector<1x128xf32> to vector<16x128xf32>
    %23 = arith.addf %20, %22 : vector<16x128xf32>
    %c0_17 = arith.constant 0 : index
    %c0_18 = arith.constant 0 : index
    %c0_19 = arith.constant 0 : index
    %24 = vector.load %arg6[%c0_17, %c0_18, %c0_19] : memref<1x16x128xf32, #tpu.memory_space<vmem>>, vector<1x16x128xf32>
    %25 = vector.shape_cast %24 : vector<1x16x128xf32> to vector<16x128xf32>
    %26 = vector.shape_cast %23 : vector<16x128xf32> to vector<1x16x128xf32>
    tpu.vector_store %arg6[%c0_17, %c0_18, %c0_19], %26 {strides = array<i32>} : memref<1x16x128xf32, #tpu.memory_space<vmem>>, vector<1x16x128xf32>,
    return
  }
  func.func @transform_0(%arg0: i32, %arg1: i32) -> (i32, i32, i32) {
    %c0_i32 = arith.constant 0 : i32
    %c0_i32_0 = arith.constant 0 : i32
    return %arg0, %arg1, %c0_i32 : i32, i32, i32
  }
  func.func @transform_1(%arg0: i32, %arg1: i32) -> (i32, i32, i32, i32) {
    %c0_i32 = arith.constant 0 : i32
    %c0_i32_0 = arith.constant 0 : i32
    %c0_i32_1 = arith.constant 0 : i32
    return %arg0, %arg1, %c0_i32, %c0_i32_0 : i32, i32, i32, i32
  }
  func.func @transform_2(%arg0: i32, %arg1: i32) -> (i32, i32, i32) {
    %c0_i32 = arith.constant 0 : i32
    %c0_i32_0 = arith.constant 0 : i32
    %c0_i32_1 = arith.constant 0 : i32
    %c0_i32_2 = arith.constant 0 : i32
    return %c0_i32, %c0_i32_0, %c0_i32_1 : i32, i32, i32
  }
  func.func @transform_3(%arg0: i32, %arg1: i32) -> (i32, i32) {
    %c0_i32 = arith.constant 0 : i32
    %c0_i32_0 = arith.constant 0 : i32
    %c0_i32_1 = arith.constant 0 : i32
    return %c0_i32, %c0_i32_0 : i32, i32
  }
  func.func @transform_4(%arg0: i32, %arg1: i32) -> (i32, i32, i32) {
    %c0_i32 = arith.constant 0 : i32
    %c0_i32_0 = arith.constant 0 : i32
    return %arg0, %arg1, %c0_i32 : i32, i32, i32
  }
}

</mosaic_0001>

<bundles_post_ra>
// kernel: conv_spe_forward.1
= control target key start
LH: loop header
LB: loop body
LE: loop exit
PB: predicated region body
PF: predicated region fallthrough
CT: control target
= control target key end

     0   :  { %s1788_s0 = inlined_call_operand.hbm [shape: f32[2,48,128], index: 0, kind: input, shape index: {}, may-alias: {0,4}]   ;;  %s1789_s1 = inlined_call_operand.hbm [shape: f32[2,3,2,128], index: 1, kind: input, shape index: {}]   ;;  %s1790_s2 = inlined_call_operand.hbm [shape: f32[3,128,128], index: 2, kind: input, shape index: {}]   ;;  %s1791_s3 = inlined_call_operand.hbm [shape: f32[1,128], index: 3, kind: input, shape index: {}]   ;;  %s1792_s4 = inlined_call_operand.hbm [shape: f32[2,48,128], index: 4, kind: output, shape index: {}, may-alias: {0,4}]  }
   0x1   :  { %1803 = sst [smem:[#allocation22_spill]] %s1788_s0 }
   0x2   :  { %1804 = sst [smem:[#allocation23_spill]] %s1790_s2 }
   0x3   :  { %1805 = sst [smem:[#allocation24_spill]] %s1791_s3 }
   0x4   :  { %9 = vsyncpa [#allocation3], 0 }
   0x5   :  { %11 = vsyncpa [#allocation3 + $0x1], 0 }
   0x6   :  { %12 = vsyncpa [#allocation6], 0 }
   0x7   :  { %14 = vsyncpa [#allocation6 + $0x1], 0 }
   0x8   :  { %15 = vsyncpa [#allocation9], 0 }
   0x9   :  { %16 = vsyncpa [#allocation4], 0 }
   0xa   :  { %18 = vsyncpa [#allocation4 + $0x1], 0  ;;  %s1429_s15 = smov 0   ;;  %s1431_s16 = smov 0  }
   0xb   :  { %s1433_s17 = smov 0   ;;  %s1435_s18 = smov 0  }
   0xc   :  { %s1437_s19 = smov 0   ;;  %s1439_s20 = smov 0  }
   0xd   :  { %s1441_s21 = smov 0   ;;  %s1443_s22 = smov 0  }
   0xe LB: > { %1806 = sst [smem:[#allocation16_spill]] %s1365_s15  ;;  %s1470_s23 = sadd.s32 4294967295, %s1393_s22   ;;  %s1393_s22 = sphi %s1443_s22, %s24_s22   ;;  %s1389_s21 = sphi %s1441_s21, %s1844_s21   ;;  %s1385_s20 = sphi %s1439_s20, %s1843_s20   ;;  %s1381_s19 = sphi %s1437_s19, %s1842_s19   ;;  %s1377_s18 = sphi %s1435_s18, %s1841_s18   ;;  %s1373_s17 = sphi %s1433_s17, %s1836_s17   ;;  %s1369_s16 = sphi %s1431_s16, %s1840_s16   ;;  %s1365_s15 = sphi %s1429_s15, %s1839_s15  }
   0xf   : > { %1807 = sst [smem:[#allocation17_spill]] %s1373_s17  ;;  %s775_s24 = sadd.s32 4294967294, %s1393_s22  }
  0x10   : > { %p58_p0 = scmp.ne.s32.totalorder %s1369_s16, %s1365_s15  ;;  %p1793_p1 = scmp.eq.s32.totalorder %s1470_s23, 0 }
  0x11   : > { %p160_p3 = scmp.eq.s32.totalorder %s775_s24, 5  ;;  %p776_p5 = scmp.ge.s32.totalorder %s1393_s22, 1 }
  0x12   : > { %p1479_p4 = por %p1793_p1, %p58_p0  ;;  %p167_p7 = scmp.lt.s32.totalorder %s1393_s22, 7 }
  0x13   : > { %p1484_p6 = por %p160_p3, %p58_p0  ;;  %s1395_s28 = smov [#allocation7]  }
  0x14   : > { %s1808_s25 = scalar_select %p1479_p4, 1, 0 }
  0x15   : > { %s1809_s26 = scalar_select %p1484_p6, 1, 0 }
  0x16   : > { %p1489_p8 = pnand %p776_p5, %p167_p7  ;;  %s179_s29 = sshll.u32 %s1395_s28, 4  ;;  %s180_s29 = int_to_ptr.vmem [resolvable:$true] %s179_s29 }
  0x17   : > { %1810 = sst [smem:[#allocation18_spill]] %s1809_s26  ;;  %s1396_s5 = smov [#allocation8]  }
  0x18   : > { %s1811_s27 = scalar_select %p1489_p8, 1, 0 }
  0x19   : > { %p1073_p9 = pneg %p1489_p8  ;;  %s193_s6 = sshll.u32 %s1396_s5, 4  ;;  %s1501_s6 = int_to_ptr.vmem [resolvable:$true] %s193_s6 }
  0x1a   : > { %s1813_s2 = sld [smem:[#allocation23_spill]] }
  0x1b   : > { %p1497_p10 = pnand %p1073_p9, %p1793_p1 }
  0x1d   : > { %p1169_p12 = pneg %p1497_p10 }
  0x20   : > { %s1167_s9 = scalar_lea.hbm %s1813_s2, 6144 }
  0x21   : > { %p1168_p11 = scmp.ne.s32.totalorder %s1813_s2, %s1167_s9  ;;  %p1174_p3 = scmp.lt.u32.totalorder %s1167_s9, %s1813_s2 }
  0x23   : > { %p1170_p13 = pnand %p1169_p12, %p1168_p11 }
  0x25   : > { %p1171_p0 = pneg %p1170_p13 }
  0x27   : > { %p1176_p5 = pnand %p1174_p3, %p1171_p0 }
  0x29   : > { %1179 = shalt.err (!%p1176_p5)
}
  0x2a   : > { %s1180_s14 = scalar_lea.vmem %s180_s29, 6144  ;;  %p1188_p2 = scmp.lt.s32.totalorder %s180_s29, %s180_s29 }
  0x2b   : > { %p1181_p7 = scmp.ne.s32.totalorder %s180_s29, %s1180_s14  ;;  %p1189_p6 = scmp.lt.s32.totalorder %s1180_s14, %s1180_s14 }
  0x2d   : > { %p1183_p9 = pnand %p1181_p7, %p1169_p12  ;;  %p1190_p4 = por %p1189_p6, %p1188_p2 }
  0x2f   : > { %p1184_p1 = pneg %p1183_p9 }
  0x31   : > { %p1191_p8 = pnand %p1190_p4, %p1184_p1 }
  0x33   : > { %1194 = shalt.err (!%p1191_p8)
}
  0x34   : > { %s1796_s24 = smov 128   ;;  %s1797_s28 = smov 8  }
  0x35   : > { %1076 = dma.hbm_to_vmem [thread:$0]  (!%p1497_p10), %s1813_s2, 6144, %s180_s29, [#allocation6], %s1796_s24, %s1796_s24, %s1797_s28  }
  0x36   : > { %s1814_s3 = sld [smem:[#allocation24_spill]] }
  0x3c   : > { %s1195_s10 = scalar_lea.hbm %s1814_s3, 16 }
  0x3d   : > { %p1196_p1 = scmp.ne.s32.totalorder %s1814_s3, %s1195_s10  ;;  %p1202_p6 = scmp.lt.u32.totalorder %s1195_s10, %s1814_s3 }
  0x3f   : > { %p1198_p2 = pnand %p1196_p1, %p1169_p12 }
  0x41   : > { %p1199_p4 = pneg %p1198_p2 }
  0x43   : > { %p1204_p8 = pnand %p1202_p6, %p1199_p4 }
  0x45   : > { %1207 = shalt.err (!%p1204_p8)
}
  0x46   : > { %s1208_s29 = scalar_lea.vmem %s1501_s6, 16  ;;  %s1215_s5 = scalar_lea.vmem %s1501_s6, 32 }
  0x47   : > { %p1209_p11 = scmp.ne.s32.totalorder %s1501_s6, %s1208_s29  ;;  %p1216_p3 = scmp.lt.s32.totalorder %s1501_s6, %s1501_s6 }
  0x48   : > { %p1217_p5 = scmp.lt.s32.totalorder %s1215_s5, %s1208_s29 }
  0x49   : > { %p1211_p13 = pnand %p1209_p11, %p1169_p12 }
  0x4a   : > { %p1218_p7 = por %p1217_p5, %p1216_p3 }
  0x4b   : > { %p1212_p0 = pneg %p1211_p13 }
  0x4d   : > { %p1219_p9 = pnand %p1218_p7, %p1212_p0 }
  0x4f   : > { %1222 = shalt.err (!%p1219_p9)
}
  0x50   : > { %1079 = dma.hbm_to_vmem [thread:$0]  (!%p1497_p10), %s1814_s3, 16, %s1501_s6, [#allocation9]  }
  0x51   : > { %s33_s9 = sadd.s32 1, %s1385_s20  ;;  %s36_s10 = sadd.s32 1, %s1389_s21 }
  0x52   : > { %p34_p12 = scmp.ge.s32.totalorder %s33_s9, 3  ;;  %s45_s30 = sadd.s32 1, %s1373_s17 }
  0x53   : > { %p52_p1 = scmp.ne.s32.totalorder %s1373_s17, %s1369_s16  ;;  %p53_p2 = scmp.eq.s32.totalorder %s1393_s22, 0 }
  0x54   : > { %s1846_s9 = smov (%p34_p12, %s33_s9), 0  ;;  %s1848_s10 = smov (!%p34_p12, %s36_s10), %s1389_s21 }
  0x55   : > { %1815 = sst [smem:[#allocation19_spill]] %s1846_s9  ;;  %s41_s11 = ssub.s32 %s1385_s20, %s1846_s9 }
  0x56   : > { %p1565_p4 = por %p53_p2, %p52_p1  ;;  %p38_p10 = scmp.ge.s32.totalorder %s1848_s10, 2 }
  0x57   : > { %p1817_p6 = scmp.eq.s32.totalorder %s1470_s23, 5  ;;  %p1093_p11 = scmp.lt.s32.totalorder %s1393_s22, 6 }
  0x58   : > { %s1577_s13 = sand.u32 1, %s1373_s17   ;;  %s1850_s10 = smov (%p38_p10, %s1848_s10), 0 }
  0x59   : > { %p1571_p8 = por %p1817_p6, %p52_p1  ;;  %1819 = sst [smem:[#allocation20_spill]] %s1850_s10 }
  0x5a   : > { %s780_s14 = sshll.u32 %s1577_s13, 4  ;;  %s40_s29 = ssub.s32 %s1389_s21, %s1850_s10 }
  0x5b   : > { %s42_s5 = sor.u32 %s41_s11, %s40_s29  ;;  %s781_s7 = sshll.u32 %s1385_s20, 1 }
  0x5c   : > { %p43_p13 = scmp.eq.s32.totalorder %s42_s5, 0  ;;  %s1056_s8 = smul.u32 6, %s1389_s21 }
  0x5d   : > { %s208_s24 = scalar_lea.vmem [#allocation2], %s780_s14  ;;  %p1588_p0 = pnand %p1093_p11, %p1565_p4 }
  0x5e   : > { %s217_s28 = sshll.u32 %s208_s24, 4  ;;  %s214_s9 = sadd.s32 %s1056_s8, %s781_s7  ;;  %s1595_s28 = int_to_ptr.vmem [resolvable:$true] %s217_s28 }
  0x5f   : > { %s1593_s3 = scalar_select %p43_p13, %s1373_s17, %s45_s30  }
  0x60   : > { %s782_s26 = sshll.u32 %s214_s9, 7  ;;  %s1822_s0 = sld [smem:[#allocation22_spill]] }
  0x61   : > { %1821 = sst [smem:[#allocation21_spill]] %s1593_s3  ;;  %s205_s12 = scalar_lea.sflag [#allocation3], %s1577_s13 }
  0x62   : > { %p1225_p5 = pneg %p1588_p0 }
  0x66   : > { %s1600_s29 = scalar_lea.hbm %s1822_s0, %s782_s26  ;;  %s1228_s10 = scalar_lea.hbm %s1822_s0, 1536 }
  0x67   : > { %s1223_s14 = scalar_lea.hbm %s1600_s29, 256  ;;  %p1229_p12 = scmp.lt.u32.totalorder %s1600_s29, %s1822_s0 }
  0x68   : > { %p1224_p3 = scmp.ne.s32.totalorder %s1600_s29, %s1223_s14  ;;  %p1230_p1 = scmp.lt.u32.totalorder %s1228_s10, %s1223_s14 }
  0x69   : > { %p1232_p4 = scmp.lt.u32.totalorder %s1223_s14, %s1600_s29 }
  0x6a   : > { %p1226_p7 = pnand %p1225_p5, %p1224_p3  ;;  %p1231_p2 = por %p1230_p1, %p1229_p12 }
  0x6c   : > { %p1227_p9 = pneg %p1226_p7  ;;  %p1233_p10 = por %p1232_p4, %p1231_p2 }
  0x6e   : > { %p1234_p6 = pnand %p1233_p10, %p1227_p9 }
  0x70   : > { %1237 = shalt.err (!%p1234_p6)
}
  0x71   : > { %s1238_s7 = scalar_lea.vmem %s1595_s28, 256  ;;  %s1399_s8 = smov [#allocation2]  }
  0x72   : > { %p1239_p11 = scmp.ne.s32.totalorder %s1595_s28, %s1238_s7  ;;  %s1243_s11 = sshll.u32 %s1399_s8, 4  ;;  %s1244_s11 = int_to_ptr.vmem [resolvable:$false] %s1243_s11 }
  0x73   : > { %s1245_s9 = scalar_lea.vmem %s1244_s11, 512  ;;  %p1246_p7 = scmp.lt.s32.totalorder %s1595_s28, %s1244_s11 }
  0x74   : > { %p1241_p13 = pnand %p1239_p11, %p1225_p5  ;;  %p1247_p12 = scmp.lt.s32.totalorder %s1245_s9, %s1238_s7 }
  0x76   : > { %p1242_p3 = pneg %p1241_p13  ;;  %p1248_p1 = por %p1247_p12, %p1246_p7 }
  0x78   : > { %p1249_p2 = pnand %p1248_p1, %p1242_p3 }
  0x7a   : > { %1252 = shalt.err (!%p1249_p2)
}
  0x7b   : > { %s1823_s14 = smov 8   ;;  %s1824_s30 = smov 128  }
  0x7c   : > { %1083 = dma.hbm_to_vmem [thread:$0]  (!%p1588_p0), %s1600_s29, 256, %s1595_s28, %s205_s12, %s1824_s30, %s1824_s30, %s1823_s14  }
  0x7d   : > { %s783_s10 = sshll.u32 %s1577_s13, 1  ;;  %s1057_s26 = smul.u32 3, %s1389_s21 }
  0x7e   : > { %s231_s5 = scalar_lea.vmem [#allocation5], %s783_s10  ;;  %s1825_s3 = sand.u32 1, %s1393_s22  }
  0x7f   : > { %s240_s7 = sshll.u32 %s231_s5, 4  ;;  %s236_s8 = sadd.s32 %s1385_s20, %s1057_s26  ;;  %s1637_s7 = int_to_ptr.vmem [resolvable:$true] %s240_s7 }
  0x80   : > { %s784_s11 = sshll.u32 %s236_s8, 5  ;;  %s228_s17 = scalar_lea.sflag [#allocation6], %s1825_s3 }
  0x81   : > { %s238_s0 = scalar_lea.hbm %s1789_s1, %s784_s11  ;;  %s1258_s29 = scalar_lea.hbm %s1789_s1, 192 }
  0x82   : > { %s1253_s15 = scalar_lea.hbm %s238_s0, 32  ;;  %p1259_p6 = scmp.lt.u32.totalorder %s238_s0, %s1789_s1 }
  0x83   : > { %p1254_p9 = scmp.ne.s32.totalorder %s238_s0, %s1253_s15  ;;  %p1260_p11 = scmp.lt.u32.totalorder %s1258_s29, %s1253_s15 }
  0x84   : > { %p1262_p3 = scmp.lt.u32.totalorder %s1253_s15, %s238_s0 }
  0x85   : > { %p1256_p4 = pnand %p1254_p9, %p1225_p5  ;;  %p1261_p13 = por %p1260_p11, %p1259_p6 }
  0x87   : > { %p1257_p10 = pneg %p1256_p4  ;;  %p1263_p7 = por %p1262_p3, %p1261_p13 }
  0x89   : > { %p1264_p12 = pnand %p1263_p7, %p1257_p10 }
  0x8b   : > { %1267 = shalt.err (!%p1264_p12)
}
  0x8c   : > { %s1268_s3 = scalar_lea.vmem %s1637_s7, 32  ;;  %s1400_s24 = smov [#allocation5]  }
  0x8d   : > { %p1269_p1 = scmp.ne.s32.totalorder %s1637_s7, %s1268_s3  ;;  %s1273_s30 = sshll.u32 %s1400_s24, 4  ;;  %s1274_s30 = int_to_ptr.vmem [resolvable:$false] %s1273_s30 }
  0x8e   : > { %s1275_s10 = scalar_lea.vmem %s1274_s30, 64  ;;  %p1276_p4 = scmp.lt.s32.totalorder %s1637_s7, %s1274_s30 }
  0x8f   : > { %p1271_p2 = pnand %p1269_p1, %p1225_p5  ;;  %p1277_p6 = scmp.lt.s32.totalorder %s1275_s10, %s1268_s3 }
  0x91   : > { %p1272_p9 = pneg %p1271_p2  ;;  %p1278_p11 = por %p1277_p6, %p1276_p4 }
  0x93   : > { %p1279_p13 = pnand %p1278_p11, %p1272_p9 }
  0x95   : > { %1282 = shalt.err (!%p1279_p13)
}
  0x96   : > { %1086 = dma.hbm_to_vmem [thread:$0]  (!%p1588_p0), %s238_s0, 32, %s1637_s7, %s228_s17  }
  0x97   : > { %p1826_p10 = scmp.ne.s32.totalorder %s1811_s27, 0 }
  0x98   : > { %s1665_s15 = sand.u32 (!%p1826_p10), 1, %s1369_s16   ;;  %p1827_p5 = scmp.ne.s32.totalorder (!%p1826_p10), %s1808_s25, 0 }
  0x99   : > { %249 = sbr.rel (%p1826_p10) target bundleno = 469 (0x1d5), region = 36  ;;  %s786_s26 = sshll.u32 (!%p1826_p10), %s1665_s15, 4 }
  0x9a   : > { %s252_s5 = scalar_lea.sflag (!%p1826_p10), [#allocation3], %s1665_s15  ;;  %s1671_s8 = scalar_lea.vmem (!%p1826_p10), [#allocation2], %s786_s26 }
  0xa0   : > { %1344 = dma.done.wait (%p1827_p5), %s252_s5, 256  }
  0xa1   : > { %1346 = vsyncadd (%p1827_p5), %s252_s5, 4294967040  ;;  %s260_s0 = sand.u32 1, %s1470_s23   ;;  %s787_s2 = sshll.u32 %s1665_s15, 1 }
  0xa2   : > { %s261_s17 = scalar_lea.sflag [#allocation6], %s260_s0  ;;  %s264_s27 = scalar_lea.vmem [#allocation5], %s787_s2 }
  0xa3   : > { %1348 = dma.done.wait (%p1827_p5), %s261_s17, 32  }
  0xa4   : > { %1350 = vsyncadd (%p1827_p5), %s261_s17, 4294967264  ;;  %p1828_p0 = scmp.eq.s32.totalorder %s1470_s23, 0 }
  0xa6   : > { %1352 = dma.done.wait (%p1828_p0), [#allocation6], 6144   ;;  %p1829_p3 = pmov %p1828_p0 }
  0xa7   : > { %p1830_p7 = pmov %p1828_p0 }
  0xa8   : > { %1354 = vsyncadd (%p1829_p3), [#allocation6], 4294961152 }
  0xa9   : > { %1356 = dma.done.wait (%p1830_p7), [#allocation9], 16   ;;  %p1831_p12 = pmov %p1828_p0 }
  0xaa   : > { %v318_v0 = vld [vmem:[#allocation7] sm:$0xff]  ;;  %v319_v1 = vld [vmem:[#allocation7 + $0x8] sm:$0xff]  ;;  %v320_v2 = vld [vmem:[#allocation7 + $0x10] sm:$0xff]  ;;  %vm309_vm0 = vcmask 1040384   ;;  %vm353_vm1 = vcmask 1046528   ;;  %vm528_vm2 = vcmask 1045504  }
  0xab   : > { %1358 = vsyncadd (%p1831_p12), [#allocation9], 4294967280  ;;  %v988_v3 = vpack.c.bf16 %v319_v1, %v318_v0  ;;  %v321_v4 = vld [vmem:[#allocation7 + $0x18] sm:$0xff]  ;;  %v322_v6 = vld [vmem:[#allocation7 + $0x20] sm:$0xff]  ;;  %s1058_s23 = smul.u32 6, %s1381_s19  ;;  %s793_s25 = sshll.u32 %s1377_s18, 1 }
  0xac   : > { %v992_v5 = vpack.c.bf16 %v321_v4, %v320_v2  ;;  %v323_v7 = vld [vmem:[#allocation7 + $0x28] sm:$0xff]  ;;  %v324_v8 = vld [vmem:[#allocation7 + $0x30] sm:$0xff]  ;;  %v325_v10 = vld [vmem:[#allocation7 + $0x38] sm:$0xff]  ;;  %s301_s11 = scalar_lea.vmem [#allocation10], %s786_s26  ;;  %s625_s29 = scalar_lea.sflag [#allocation4], %s1665_s15 }
  0xad   : > { %989 = vmatprep.subr.bf16.mxu0 %v988_v3  ;;  %v996_v9 = vpack.c.bf16 %v323_v7, %v322_v6  ;;  %v335_v11 = vld [vmem:[#allocation7 + $0x80] sm:$0xff]  ;;  %v336_v12 = vld [vmem:[#allocation7 + $0x88] sm:$0xff]  ;;  %v1695_v16 = vld [vmem:[%s264_s27] sm:$0x3]  ;;  %v1000_v21 = vpack.c.bf16 %v325_v10, %v324_v8  ;;  %s637_s7 = sadd.s32 %s1058_s23, %s793_s25  ;;  %s640_s9 = sshll.u32 %s301_s11, 4  ;;  %s1729_s9 = int_to_ptr.vmem [resolvable:$true] %s640_s9 }
  0xae   : > { %991 = vmatpush3.bf16.msra.mxu0 %v988_v3  ;;  %v956_v13 = vpack.c.bf16 %v336_v12, %v335_v11  ;;  %v304_v14 = vld [vmem:[%s1671_s8] sm:$0xff]  ;;  %v1693_v15 = vld [vmem:[%s1671_s8 + $0x8] sm:$0xff]  ;;  %s794_s28 = sshll.u32 %s637_s7, 7  ;;  %s1283_s12 = scalar_lea.vmem %s1729_s9, 256 }
  0xaf   : > { %993 = vmatprep.subr.bf16.mxu0 %v992_v5  ;;  %v310_v17 = vrot.slane %v304_v14, 7  ;;  %v311_v18 = vrot.slane %v1693_v15, 7  ;;  %v337_v19 = vld [vmem:[#allocation7 + $0x90] sm:$0xff]  ;;  %v338_v20 = vld [vmem:[#allocation7 + $0x98] sm:$0xff]  ;;  %v339_v24 = vld [vmem:[#allocation7 + $0xa0] sm:$0xff]  ;;  %s1734_s13 = scalar_lea.hbm %s1792_s4, %s794_s28  ;;  %p1284_p1 = scmp.ne.s32.totalorder %s1729_s9, %s1283_s12 }
  0xb0   : > { %957 = vmatprep.subr.bf16.mxu1 %v956_v13  ;;  %v340_v25 = vld [vmem:[#allocation7 + $0xa8] sm:$0xff]  ;;  %v326_v26 = vld [vmem:[#allocation7 + $0x40] sm:$0xff]  ;;  %v960_v30 = vpack.c.bf16 %v338_v20, %v337_v19  ;;  %v341_v32 = vld [vmem:[#allocation7 + $0xb0] sm:$0xff]  ;;  %s1401_s14 = smov [#allocation10]  }
  0xb1   : > { %959 = vmatpush3.bf16.msra.mxu1 %v956_v13  ;;  %v1700_v22 = vsel %vm309_vm0, %v1695_v16, %v310_v17  ;;  %v1705_v23 = vsel %vm309_vm0, %v310_v17, %v311_v18  ;;  %v327_v27 = vld [vmem:[#allocation7 + $0x48] sm:$0xff]  ;;  %v964_v31 = vpack.c.bf16 %v340_v25, %v339_v24  ;;  %v342_v33 = vld [vmem:[#allocation7 + $0xb8] sm:$0xff]  ;;  %v328_v36 = vld [vmem:[#allocation7 + $0x50] sm:$0xff]  ;;  %v317_v0 = vsel %vm309_vm0, %v311_v18, %v1695_v16  ;;  %p1285_p2 = pnand %p1284_p1, %p1571_p8  ;;  %s1287_s3 = sshll.u32 %s1401_s14, 4  ;;  %s1288_s3 = int_to_ptr.vmem [resolvable:$false] %s1287_s3 }
  0xb2   : > { %995 = vmatpush3.bf16.msra.mxu0 %v992_v5  ;;  %v354_v28 = vrot.slane %v1700_v22, 1  ;;  %918 = vmatprep.mubr.f32.mxu0 %v1700_v22  ;;  %v355_v29 = vrot.slane %v1705_v23, 1  ;;  %v1004_v35 = vpack.c.bf16 %v327_v27, %v326_v26  ;;  %v329_v37 = vld [vmem:[#allocation7 + $0x58] sm:$0xff]  ;;  %v968_v38 = vpack.c.bf16 %v342_v33, %v341_v32  ;;  %v343_v39 = vld [vmem:[#allocation7 + $0xc0] sm:$0xff]  ;;  %v344_v40 = vld [vmem:[#allocation7 + $0xc8] sm:$0xff]  ;;  %s1289_s24 = scalar_lea.vmem %s1288_s3, 512  ;;  %p1290_p4 = scmp.lt.s32.totalorder %s1729_s9, %s1288_s3 }
  0xb3   : > { %997 = vmatprep.subr.bf16.mxu0 %v996_v9  ;;  %961 = vmatprep.subr.bf16.mxu1 %v960_v30  ;;  %v1008_v41 = vpack.c.bf16 %v329_v37, %v328_v36  ;;  %v330_v42 = vld [vmem:[#allocation7 + $0x60] sm:$0xff]  ;;  %v331_v43 = vld [vmem:[#allocation7 + $0x68] sm:$0xff]  ;;  %v972_v44 = vpack.c.bf16 %v344_v40, %v343_v39  ;;  %v345_v45 = vld [vmem:[#allocation7 + $0xd0] sm:$0xff]  ;;  %v529_v59 = vrot.slane %v1700_v22, 2  ;;  %v530_v61 = vrot.slane %v1705_v23, 2  ;;  %p1286_p9 = pneg %p1285_p2  ;;  %p1291_p6 = scmp.lt.s32.totalorder %s1289_s24, %s1283_s12 }
  0xb4   : > { %v356_v34 = vsel %vm353_vm1, %v354_v28, %v355_v29  ;;  %v346_v46 = vld [vmem:[#allocation7 + $0xd8] sm:$0xff]  ;;  %v1012_v47 = vpack.c.bf16 %v331_v43, %v330_v42  ;;  %v332_v48 = vld [vmem:[#allocation7 + $0x70] sm:$0xff]  ;;  %v347_v51 = vld [vmem:[#allocation7 + $0xe0] sm:$0xff]  ;;  %v357_v6 = vrot.slane %v317_v0, 1  ;;  %v532_v24 = vrot.slane %v317_v0, 2 }
  0xb5   : > { %963 = vmatpush3.bf16.msra.mxu1 %v960_v30  ;;  %883 = vmatprep.mubr.f32.mxu1 %v356_v34  ;;  %v333_v49 = vld [vmem:[#allocation7 + $0x78] sm:$0xff]  ;;  %v976_v50 = vpack.c.bf16 %v346_v46, %v345_v45  ;;  %v348_v52 = vld [vmem:[#allocation7 + $0xe8] sm:$0xff]  ;;  %v512_v54 = vld [vmem:[#allocation7 + $0x100] sm:$0xff]  ;;  %v531_v3 = vsel %vm528_vm2, %v529_v59, %v530_v61  ;;  %p1292_p11 = por %p1291_p6, %p1290_p4 }
  0xb6   : > { %999 = vmatpush3.bf16.msra.mxu0 %v996_v9  ;;  %965 = vmatprep.subr.bf16.mxu1 %v964_v31  ;;  %v1016_v53 = vpack.c.bf16 %v333_v49, %v332_v48  ;;  %v513_v55 = vld [vmem:[#allocation7 + $0x108] sm:$0xff]  ;;  %v980_v56 = vpack.c.bf16 %v348_v52, %v347_v51  ;;  %v349_v57 = vld [vmem:[#allocation7 + $0xf0] sm:$0xff]  ;;  %v350_v58 = vld [vmem:[#allocation7 + $0xf8] sm:$0xff]  ;;  %v358_v10 = vsel %vm353_vm1, %v355_v29, %v357_v6 }
  0xb7   : > { %1001 = vmatprep.subr.bf16.mxu0 %v1000_v21  ;;  %v1020_v60 = vpack.c.bf16 %v513_v55, %v512_v54  ;;  %v514_v62 = vld [vmem:[#allocation7 + $0x110] sm:$0xff]  ;;  %v515_v63 = vld [vmem:[#allocation7 + $0x118] sm:$0xff]  ;;  %v984_v1 = vpack.c.bf16 %v350_v58, %v349_v57  ;;  %v516_v4 = vld [vmem:[#allocation7 + $0x120] sm:$0xff]  ;;  %v533_v25 = vsel %vm528_vm2, %v530_v61, %v532_v24  ;;  %p1293_p13 = pnand %p1292_p11, %p1286_p9 }
  0xb8   : > { %v1024_v2 = vpack.c.bf16 %v515_v63, %v514_v62  ;;  %v517_v5 = vld [vmem:[#allocation7 + $0x128] sm:$0xff]  ;;  %v518_v8 = vld [vmem:[#allocation7 + $0x130] sm:$0xff]  ;;  %v519_v9 = vld [vmem:[#allocation7 + $0x138] sm:$0xff] }
  0xb9   : > { %967 = vmatpush3.bf16.msra.mxu1 %v964_v31  ;;  %v1028_v7 = vpack.c.bf16 %v517_v5, %v516_v4  ;;  %v1032_v11 = vpack.c.bf16 %v519_v9, %v518_v8  ;;  %v520_v12 = vld [vmem:[#allocation7 + $0x140] sm:$0xff]  ;;  %v521_v13 = vld [vmem:[#allocation7 + $0x148] sm:$0xff]  ;;  %v522_v15 = vld [vmem:[#allocation7 + $0x150] sm:$0xff] }
  0xba   : > { %1003 = vmatpush3.bf16.msra.mxu0 %v1000_v21  ;;  %969 = vmatprep.subr.bf16.mxu1 %v968_v38  ;;  %v1036_v14 = vpack.c.bf16 %v521_v13, %v520_v12  ;;  %v523_v16 = vld [vmem:[#allocation7 + $0x158] sm:$0xff]  ;;  %v524_v18 = vld [vmem:[#allocation7 + $0x160] sm:$0xff]  ;;  %v525_v19 = vld [vmem:[#allocation7 + $0x168] sm:$0xff] }
  0xbb   : > { %1005 = vmatprep.subr.bf16.mxu0 %v1004_v35  ;;  %v1040_v17 = vpack.c.bf16 %v523_v16, %v522_v15  ;;  %v1044_v20 = vpack.c.bf16 %v525_v19, %v524_v18  ;;  %v526_v21 = vld [vmem:[#allocation7 + $0x170] sm:$0xff]  ;;  %v527_v22 = vld [vmem:[#allocation7 + $0x178] sm:$0xff]  ;;  %v791_v29 = vld [vmem:[#allocation8] ss:$0 sm:$0xff] }
  0xbd   : > { %971 = vmatpush3.bf16.msra.mxu1 %v968_v38 }
  0xbe   : > { %1007 = vmatpush3.bf16.msra.mxu0 %v1004_v35  ;;  %973 = vmatprep.subr.bf16.mxu1 %v972_v44 }
  0xbf   : > { %1009 = vmatprep.subr.bf16.mxu0 %v1008_v41 }
  0xc1   : > { %975 = vmatpush3.bf16.msra.mxu1 %v972_v44 }
  0xc2   : > { %1011 = vmatpush3.bf16.msra.mxu0 %v1008_v41  ;;  %977 = vmatprep.subr.bf16.mxu1 %v976_v50 }
  0xc3   : > { %1013 = vmatprep.subr.bf16.mxu0 %v1012_v47 }
  0xc5   : > { %979 = vmatpush3.bf16.msra.mxu1 %v976_v50 }
  0xc6   : > { %1015 = vmatpush3.bf16.msra.mxu0 %v1012_v47  ;;  %981 = vmatprep.subr.bf16.mxu1 %v980_v56 }
  0xc7   : > { %1017 = vmatprep.subr.bf16.mxu0 %v1016_v53 }
  0xc9   : > { %983 = vmatpush3.bf16.msra.mxu1 %v980_v56 }
  0xca   : > { %1019 = vmatpush3.bf16.msra.mxu0 %v1016_v53  ;;  %985 = vmatprep.subr.bf16.mxu1 %v984_v1 }
  0xcb   : > { %1021 = vmatprep.subr.bf16.mxu0 %v1020_v60 }
  0xcd   : > { %919 = vmatmul.mubr.f32.vlgmr.msra.gmra.mrb[0].mxu0 %v1705_v23  ;;  %987 = vmatpush3.bf16.msra.mxu1 %v984_v1  ;;  %v1048_v23 = vpack.c.bf16 %v527_v22, %v526_v21 }
  0xce   : > { %1023 = vmatpush3.bf16.msra.mxu0 %v1020_v60  ;;  %953 = vmatprep.mubr.f32.mxu0 %v531_v3 }
  0xcf   : > { %1025 = vmatprep.subr.bf16.mxu0 %v1024_v2 }
  0xd0   : > { %884 = vmatmul.mubr.f32.vlgmr.msra.gmra.mrb[0].mxu1 %v358_v10 }
  0xd2   : > { %1027 = vmatpush3.bf16.msra.mxu0 %v1024_v2 }
  0xd3   : > { %1029 = vmatprep.subr.bf16.mxu0 %v1028_v7 }
  0xd6   : > { %1031 = vmatpush3.bf16.msra.mxu0 %v1028_v7 }
  0xd7   : > { %1033 = vmatprep.subr.bf16.mxu0 %v1032_v11 }
  0xda   : > { %1035 = vmatpush3.bf16.msra.mxu0 %v1032_v11 }
  0xdb   : > { %1037 = vmatprep.subr.bf16.mxu0 %v1036_v14 }
  0xde   : > { %1039 = vmatpush3.bf16.msra.mxu0 %v1036_v14 }
  0xdf   : > { %1041 = vmatprep.subr.bf16.mxu0 %v1040_v17 }
  0xe2   : > { %1043 = vmatpush3.bf16.msra.mxu0 %v1040_v17 }
  0xe3   : > { %1045 = vmatprep.subr.bf16.mxu0 %v1044_v20 }
  0xe6   : > { %1047 = vmatpush3.bf16.msra.mxu0 %v1044_v20 }
  0xe7   : > { %1049 = vmatprep.subr.bf16.mxu0 %v1048_v23 }
  0xea   : > { %1051 = vmatpush3.bf16.msra.mxu0 %v1048_v23 }
  0xed   : > { %954 = vmatmul.mubr.f32.vlgmr.msra.gmra.mrb[0].mxu0 %v533_v25 }
 0x1a3   : > { %v885_v26 = vpop.f32.mrb[0].mxu1 }
 0x1a4   : > { %v427_v27 = vpop.f32.mrb[1].mxu1 }
 0x1c0   : > { %v955_v28 = vpop.f32.mrb[0].mxu0 }
 0x1c1   : > { %v1052_v30 = vadd.f32 %v955_v28, %v885_v26  ;;  %v602_v31 = vpop.f32.mrb[1].mxu0 }
 0x1c2   : > { %v1053_v32 = vadd.f32 %v602_v31, %v427_v27 }
 0x1c3   : > { %v621_v33 = vadd.f32 %v1052_v30, %v791_v29 }
 0x1c4   : > { %v620_v34 = vadd.f32 %v1053_v32, %v791_v29 }
 0x1c5   : > { %623 = vst [vmem:[%s301_s11 + $0x8] sm:$0xff] %v621_v33 }
 0x1c6   : > { %622 = vst [vmem:[%s301_s11] sm:$0xff] %v620_v34 }
 0x1c7   : > { %1296 = shalt.err (!%p1293_p13)
}
 0x1c8   : > { %s1297_s30 = scalar_lea.hbm %s1734_s13, 256  ;;  %s1301_s5 = scalar_lea.hbm %s1792_s4, 1536 }
 0x1c9   : > { %p1298_p10 = scmp.ne.s32.totalorder %s1734_s13, %s1297_s30  ;;  %p1302_p3 = scmp.lt.u32.totalorder %s1734_s13, %s1792_s4 }
 0x1ca   : > { %p1303_p7 = scmp.lt.u32.totalorder %s1301_s5, %s1297_s30  ;;  %p1305_p1 = scmp.lt.u32.totalorder %s1297_s30, %s1734_s13 }
 0x1cb   : > { %p1299_p5 = pnand %p1298_p10, %p1571_p8 }
 0x1cc   : > { %p1304_p12 = por %p1303_p7, %p1302_p3 }
 0x1cd   : > { %p1300_p0 = pneg %p1299_p5 }
 0x1ce   : > { %p1306_p2 = por %p1305_p1, %p1304_p12 }
 0x1d0   : > { %p1307_p9 = pnand %p1306_p2, %p1300_p0 }
 0x1d2   : > { %1310 = shalt.err (!%p1307_p9)
}
 0x1d3   : > { %s1402_s2 = smov 128   ;;  %s1403_s17 = smov 8  }
 0x1d4   : > { %1071 = dma.vmem_to_hbm [thread:$0]  (%p1571_p8), %s1729_s9, 256, %s1734_s13, %s625_s29, %s1402_s2, %s1402_s2, %s1403_s17  }
 0x1d5 PF: > { %s1832_s27 = sld [smem:[#allocation16_spill]]  ;;  %s1833_s23 = sld [smem:[#allocation18_spill]] }
 0x1d6   : > { %p1096_p4 = scmp.ge.s32.totalorder %s1393_s22, 2 }
 0x1db   : > { %s655_s25 = sand.u32 1, %s1832_s27   ;;  %p1834_p6 = scmp.ne.s32.totalorder %s1833_s23, 0 }
 0x1dc   : > { %s656_s7 = scalar_lea.sflag [#allocation4], %s655_s25 }
 0x1dd   : > { %p1088_p11 = pnand %p1096_p4, %p1834_p6 }
 0x1df   : > { %1360 = dma.done.wait (!%p1088_p11), %s656_s7, 256  }
 0x1e0   : > { %1362 = vsyncadd (!%p1088_p11), %s656_s7, 4294967040  ;;  %s24_s22 = sadd.s32 1, %s1393_s22   ;;  %s1835_s11 = sld [smem:[#allocation17_spill]] }
 0x1e1   : > { %p21_p13 = scmp.ge.s32.totalorder %s24_s22, 8   ;;  %s1836_s17 = sld [smem:[#allocation21_spill]] }
 0x1e2   : > { %s1837_s6 = sld [smem:[#allocation19_spill]]  ;;  %s1838_s9 = sld [smem:[#allocation20_spill]] }
 0x1e3   : > { %s1839_s15 = smov %s1369_s16  ;;  %s1841_s18 = smov %s1385_s20 }
 0x1e4   : > { %s1842_s19 = smov %s1389_s21  ;;  %23 = sbr.rel (!%p21_p13) target bundleno = 14 (0xe), region = 104 }
 0x1e6   : > { %s1840_s16 = smov %s1835_s11 }
 0x1e8   : > { %s1843_s20 = smov %s1837_s6  ;;  %s1844_s21 = smov %s1838_s9 }
 0x1eb   :  { %661 = vsyncpa [#allocation3], 1 }
 0x1ec   :  { %663 = vsyncpa [#allocation3 + $0x1], 1 }
 0x1ed   :  { %664 = vsyncpa [#allocation6], 1 }
 0x1ee   :  { %666 = vsyncpa [#allocation6 + $0x1], 1 }
 0x1ef   :  { %667 = vsyncpa [#allocation9], 1 }
 0x1f0   :  { %668 = vsyncpa [#allocation4], 1 }
 0x1f1   :  { %670 = vsyncpa [#allocation4 + $0x1], 1 }

</bundles_post_ra>
